<compile_context>
chip_gen: v7x
topology: tpu7x:2x2x1
jax: 0.10.0
libtpu: 0.0.40
codegen_flags: <defaults>
</compile_context>

<pallas_src>
import functools

import jax
import jax.numpy as jnp
from jax.experimental import pallas as pl
from jax.experimental.pallas import tpu as pltpu


# ----------------------------------------------------------------------------
# Kernels (elementwise hot path)
# ----------------------------------------------------------------------------
def _pe_add_kernel(x_ref, pe_ref, o_ref):
    """Eval-mode forward: out = x + pe (dropout is identity).

    x_ref:  (B, TN)   pe_ref: (1, TN)  -> broadcast over batch rows.
    """
    o_ref[...] = (x_ref[...] + pe_ref[...]).astype(o_ref.dtype)


def _pe_add_dropout_kernel(x_ref, pe_ref, m_ref, o_ref, *, scale):
    """Train-mode forward: out = (x + pe) * keep_mask * 1/(1-p).

    m_ref holds the 0/1 keep-mask already in x.dtype; scale is a Python float
    so everything stays in a single dtype on the VPU.
    """
    y = x_ref[...] + pe_ref[...]
    o_ref[...] = (y * (m_ref[...] * scale)).astype(o_ref.dtype)


# ----------------------------------------------------------------------------
# Parameter / buffer setup (deterministic, matches PyTorch __init__)
# ----------------------------------------------------------------------------
def make_positional_embedding(embedding_dim, sq_len, dtype=jnp.float32):
    position = jnp.arange(sq_len, dtype=jnp.float32)[:, None]            # (S, 1)
    div_term = 10000.0 ** (
        jnp.arange(0, embedding_dim, 2, dtype=jnp.float32) / embedding_dim
    )                                                                    # (E/2,)
    angles = position / div_term                                         # (S, E/2)
    pe = jnp.zeros((sq_len, embedding_dim), jnp.float32)
    pe = pe.at[:, 0::2].set(jnp.sin(angles))
    pe = pe.at[:, 1::2].set(jnp.cos(angles))
    return pe[None, :, :].astype(dtype)                                  # (1, S, E)


# ----------------------------------------------------------------------------
# Tiling helper
# ----------------------------------------------------------------------------
def _choose_tile_n(n, b, itemsize, target_block_bytes=1 << 20):
    """Pick a lane-dense (multiple-of-128) tile of the flattened S*E axis.

    Sized so one x block (B rows x TN lanes) is ~1 MiB -> with double
    buffering of x/pe/mask/out this stays far below the 16/32/32 MiB scoped
    VMEM defaults on v5e/v6e/v7x while amortizing per-grid-step overhead.
    """
    if n % 128 != 0:
        # Rare fallback (E*S not a multiple of 128): single full-width block.
        return n
    tn = (target_block_bytes // max(1, b * itemsize)) // 128 * 128
    tn = max(128, tn)
    return int(min(n, tn))


# ----------------------------------------------------------------------------
# Wrapper (forward pass)
# ----------------------------------------------------------------------------
def positional_encoding_forward(x, pe, *, dropout_p=0.1, training=False,
                                rng_key=None):
    """x: [B, S, E], pe: [1, sq_len, E] with sq_len >= S."""
    B, S, E = x.shape
    N = S * E
    dt = x.dtype
    itemsize = jnp.dtype(dt).itemsize

    # Slice the buffer to the actual sequence length, pin dtype, flatten.
    pe_flat = pe[:, :S, :].astype(dt).reshape(1, N)
    x_flat = x.reshape(B, N)

    tn = _choose_tile_n(N, B, itemsize)
    grid = (pl.cdiv(N, tn),)

    x_spec = pl.BlockSpec((B, tn), lambda j: (0, j))
    pe_spec = pl.BlockSpec((1, tn), lambda j: (0, j))   # broadcast over batch
    out_spec = pl.BlockSpec((B, tn), lambda j: (0, j))
    compiler_params = pltpu.CompilerParams(dimension_semantics=("parallel",))

    if training and dropout_p > 0.0:
        if dropout_p >= 1.0:
            # Everything dropped; avoid the 1/(1-p) singularity.
            return jnp.zeros_like(x)
        if rng_key is None:
            rng_key = jax.random.PRNGKey(0)
        keep = jax.random.bernoulli(
            rng_key, p=1.0 - float(dropout_p), shape=(B, N)
        ).astype(dt)
        scale = 1.0 / (1.0 - float(dropout_p))
        kernel = functools.partial(_pe_add_dropout_kernel, scale=scale)
        cost = pl.CostEstimate(
            flops=3 * B * N,
            transcendentals=0,
            bytes_accessed=(3 * B * N + N) * itemsize,
        )
        out = pl.pallas_call(
            kernel,
            out_shape=jax.ShapeDtypeStruct((B, N), dt),
            grid=grid,
            in_specs=[x_spec, pe_spec, pl.BlockSpec((B, tn), lambda j: (0, j))],
            out_specs=out_spec,
            compiler_params=compiler_params,
            cost_estimate=cost,
        )(x_flat, pe_flat, keep)
        return out.reshape(B, S, E)

    # Eval mode: dropout is identity.
    cost = pl.CostEstimate(
        flops=B * N,
        transcendentals=0,
        bytes_accessed=(2 * B * N + N) * itemsize,
    )
    out = pl.pallas_call(
        _pe_add_kernel,
        out_shape=jax.ShapeDtypeStruct((B, N), dt),
        grid=grid,
        in_specs=[x_spec, pe_spec],
        out_specs=out_spec,
        compiler_params=compiler_params,
        cost_estimate=cost,
    )(x_flat, pe_flat)
    return out.reshape(B, S, E)


# ----------------------------------------------------------------------------
# Demo / self-check
# ----------------------------------------------------------------------------
if __name__ == "__main__":
    B, S, E = 2, 8, 32
    SQ_LEN = 16          # buffer is longer than the actual sequence (exercises slicing)
    DROPOUT_P = 0.1

    key = jax.random.PRNGKey(0)
    kx, kdrop = jax.random.split(key)
    x = jax.random.normal(kx, (B, S, E), dtype=jnp.float32)

    pe = make_positional_embedding(E, SQ_LEN)

    # Eval-mode forward (deterministic) -- verify against pure-JAX reference.
    out_eval = positional_encoding_forward(x, pe, dropout_p=DROPOUT_P, training=False)
    out_eval = jax.block_until_ready(out_eval)
    ref = x + pe[:, :S, :]
    assert out_eval.shape == (B, S, E)
    assert out_eval.dtype == x.dtype
    assert jnp.allclose(out_eval, ref, atol=1e-6, rtol=1e-6), "eval-mode mismatch"

    # Train-mode forward (inverted dropout) -- sanity check: surviving elements
    # equal (x+pe)/(1-p), dropped ones are exactly zero.
    out_train = positional_encoding_forward(
        x, pe, dropout_p=DROPOUT_P, training=True, rng_key=kdrop
    )
    out_train = jax.block_until_ready(out_train)
    scaled = ref / (1.0 - DROPOUT_P)
    is_zero = jnp.isclose(out_train, 0.0)
    is_kept = jnp.isclose(out_train, scaled, atol=1e-5, rtol=1e-5)
    assert bool(jnp.all(is_zero | is_kept)), "train-mode dropout mismatch"

    print("KERNEL_OK")
</pallas_src>

<mosaic_0001>
module attributes {stable_mosaic.version = 11 : i64} {
  func.func @_pe_add_kernel(%arg0: i32, %arg1: memref<2x256xf32, #tpu.memory_space<vmem>>, %arg2: memref<1x256xf32, #tpu.memory_space<vmem>>, %arg3: memref<2x256xf32, #tpu.memory_space<vmem>>) attributes {dimension_semantics = [#tpu.dimension_semantics<parallel>], iteration_bounds = array<i64: 1>, scalar_prefetch = 0 : i64, scratch_operands = 0 : i64, tpu.core_type = #tpu.core_type<tc>, window_params = [{transform_indices = @transform_0, window_bounds = array<i64: 2, 256>}, {transform_indices = @transform_1, window_bounds = array<i64: 1, 256>}, {transform_indices = @transform_2, window_bounds = array<i64: 2, 256>}]} {
    %c0 = arith.constant 0 : index
    %c0_0 = arith.constant 0 : index
    %0 = vector.load %arg1[%c0, %c0_0] : memref<2x256xf32, #tpu.memory_space<vmem>>, vector<2x256xf32>
    %c0_1 = arith.constant 0 : index
    %c0_2 = arith.constant 0 : index
    %1 = vector.load %arg2[%c0_1, %c0_2] : memref<1x256xf32, #tpu.memory_space<vmem>>, vector<1x256xf32>
    %2 = vector.broadcast %1 : vector<1x256xf32> to vector<2x256xf32>
    %3 = arith.addf %0, %2 : vector<2x256xf32>
    %c0_3 = arith.constant 0 : index
    %c0_4 = arith.constant 0 : index
    %4 = vector.load %arg3[%c0_3, %c0_4] : memref<2x256xf32, #tpu.memory_space<vmem>>, vector<2x256xf32>
    tpu.vector_store %arg3[%c0_3, %c0_4], %3 {strides = array<i32>} : memref<2x256xf32, #tpu.memory_space<vmem>>, vector<2x256xf32>,
    return
  }
  func.func @transform_0(%arg0: i32) -> (i32, i32) {
    %c0_i32 = arith.constant 0 : i32
    %c0_i32_0 = arith.constant 0 : i32
    return %c0_i32, %arg0 : i32, i32
  }
  func.func @transform_1(%arg0: i32) -> (i32, i32) {
    %c0_i32 = arith.constant 0 : i32
    %c0_i32_0 = arith.constant 0 : i32
    return %c0_i32, %arg0 : i32, i32
  }
  func.func @transform_2(%arg0: i32) -> (i32, i32) {
    %c0_i32 = arith.constant 0 : i32
    %c0_i32_0 = arith.constant 0 : i32
    return %c0_i32, %arg0 : i32, i32
  }
}

</mosaic_0001>

<bundles_post_ra>
// kernel: tpu_custom_call.1
= control target key start
LH: loop header
LB: loop body
LE: loop exit
PB: predicated region body
PF: predicated region fallthrough
CT: control target
= control target key end

     0   :  { %7 = vsyncpa [#allocation3], 0  ;;  %s157_s0 = inlined_call_operand.hbm [shape: f32[2,256], index: 0, kind: input, shape index: {}]   ;;  %s158_s1 = inlined_call_operand.vmem [shape: f32[1,256], index: 1, kind: input, shape index: {}]   ;;  %s159_s2 = inlined_call_operand.hbm [shape: f32[2,256], index: 2, kind: output, shape index: {}]  }
   0x1   :  { %8 = vsyncpa [#allocation4], 0  ;;  %s112_s9 = smov [#allocation2]   ;;  %s64_s13 = scalar_lea.hbm %s157_s0, 64 }
   0x2   :  { %s15_s10 = sshll.u32 %s112_s9, 4  ;;  %p65_p0 = scmp.ne.s32.totalorder %s157_s0, %s64_s13  ;;  %s16_s10 = int_to_ptr.vmem [resolvable:$true] %s15_s10 }
   0x3   :  { %p68_p1 = scmp.lt.u32.totalorder %s64_s13, %s157_s0 }
   0x5   :  { %p70_p2 = pnand %p68_p1, %p65_p0 }
   0x7   :  { %73 = shalt.err (!%p70_p2)
}
   0x8   :  { %s74_s18 = scalar_lea.vmem %s16_s10, 64  ;;  %p79_p4 = scmp.lt.s32.totalorder %s16_s10, %s16_s10 }
   0x9   :  { %p75_p3 = scmp.ne.s32.totalorder %s16_s10, %s74_s18  ;;  %p80_p5 = scmp.lt.s32.totalorder %s74_s18, %s74_s18 }
   0xb   :  { %p81_p6 = por %p80_p5, %p79_p4 }
   0xd   :  { %p82_p7 = pnand %p81_p6, %p75_p3 }
   0xf   :  { %85 = shalt.err (!%p82_p7)
}
  0x10   :  { %18 = dma.hbm_to_vmem [thread:$0]  %s157_s0, 64, %s16_s10, [#allocation3]  }
  0x11   :  { %108 = dma.done.wait [#allocation3], 64  }
  0x12   :  { %109 = vsyncadd [#allocation3], 4294967232  ;;  %v27_v0 = vlaneseq  ;;  %v113_v1 = vmov 1983009808   ;;  %v25_v7 = vld [vmem:[%s158_s1] sm:$0x3] }
  0x13   :  { %v37_v2 = vunpack.c.l.s4 %v113_v1  ;;  %v24_v12 = vld [vmem:[#allocation2] sm:$0xf]  ;;  %s114_s23 = smov [#allocation5]  }
  0x14   :  { %v28_v3 = vshrl.u32 %v27_v0, 7  ;;  %s52_s0 = sshll.u32 %s114_s23, 4  ;;  %s53_s0 = int_to_ptr.vmem [resolvable:$true] %s52_s0 }
  0x15   :  { %v38_v6 = vunpack.c.0.s8 %v37_v2  ;;  %s86_s24 = scalar_lea.vmem %s53_s0, 64  ;;  %p91_p9 = scmp.lt.s32.totalorder %s53_s0, %s53_s0 }
  0x16   :  { %v29_v4 = vsub.s32 0, %v28_v3  ;;  %v33_v5 = vsub.s32 1, %v28_v3  ;;  %p87_p8 = scmp.ne.s32.totalorder %s53_s0, %s86_s24  ;;  %p92_p10 = scmp.lt.s32.totalorder %s86_s24, %s86_s24 }
  0x17   :  { %v41_v10 = vsub.s32 %v38_v6, %v28_v3 }
  0x18   :  { %v30_v8 = vrot.slane %v25_v7, %v29_v4  ;;  %v34_v9 = vrot.slane %v25_v7, %v33_v5  ;;  %p93_p11 = por %p92_p10, %p91_p9 }
  0x1a   :  { %v35_v11 = vcombine.low %v30_v8, %v34_v9  ;;  %p94_p12 = pnand %p93_p11, %p87_p8 }
  0x1c   :  { %v42_v13 = vrot.slane %v35_v11, %v41_v10 }
  0x1e   :  { %v44_v14 = vadd.f32 %v42_v13, %v24_v12 }
  0x20   :  { %45 = vst [vmem:[#allocation5] sm:$0xf] %v44_v14 }
  0x21   :  { %97 = shalt.err (!%p94_p12)
}
  0x22   :  { %s98_s26 = scalar_lea.hbm %s159_s2, 64 }
  0x23   :  { %p99_p13 = scmp.ne.s32.totalorder %s159_s2, %s98_s26  ;;  %p102_p0 = scmp.lt.u32.totalorder %s98_s26, %s159_s2 }
  0x25   :  { %p104_p1 = pnand %p102_p0, %p99_p13 }
  0x27   :  { %107 = shalt.err (!%p104_p1)
}
  0x28   :  { %55 = dma.vmem_to_hbm [thread:$0]  %s53_s0, 64, %s159_s2, [#allocation4]  }
  0x29   :  { %110 = dma.done.wait [#allocation4], 64  }
  0x2a   :  { %111 = vsyncadd [#allocation4], 4294967232 }
  0x2b   :  { %59 = vsyncpa [#allocation3], 1 }
  0x2c   :  { %60 = vsyncpa [#allocation4], 1 }

</bundles_post_ra>
